<compile_context>
chip_gen: v7x
topology: tpu7x:2x2x1
jax: 0.10.0
libtpu: 0.0.40
codegen_flags: <defaults>
</compile_context>

<pallas_src>
import functools
import math

import numpy as np
import jax
import jax.numpy as jnp
from jax import lax
from jax.experimental import pallas as pl
from jax.experimental.pallas import tpu as pltpu


# ----------------------------- weight construction ---------------------------

def _aa_bilinear_weight_matrix(in_size, out_size):
    """(out_size, in_size) row-stochastic matrix replicating PyTorch's
    _upsample_bilinear2d_aa (antialiased triangle filter, align_corners=False)."""
    scale = in_size / out_size
    if scale > 1.0:          # antialiased downscale: widen filter support
        support, invscale = scale, 1.0 / scale
    else:                    # upscale: antialias is a no-op
        support, invscale = 1.0, 1.0
    w = np.zeros((out_size, in_size), dtype=np.float64)
    for i in range(out_size):
        center = scale * (i + 0.5)
        lo = max(int(center - support + 0.5), 0)
        hi = min(int(center + support + 0.5), in_size)
        js = np.arange(lo, hi, dtype=np.float64)
        vals = np.maximum(0.0, 1.0 - np.abs((js - center + 0.5) * invscale))
        s = vals.sum()
        if s > 0:
            vals = vals / s
        w[i, lo:hi] = vals
    return w


def _padded_aa_matrix(full, start, crop, out):
    """(out, full) resize matrix with the crop window [start, start+crop) baked
    in as zero-padded columns: applying it to the UNCROPPED axis equals
    crop-then-resize along that axis."""
    w = np.zeros((out, full), dtype=np.float64)
    w[:, start:start + crop] = _aa_bilinear_weight_matrix(crop, out)
    return w


@functools.lru_cache(maxsize=1024)   # bounded: key space ~ (max_wiggle+1)^2 / 2
def _height_weight(full, start, crop, out, group):
    """Block-diagonal (group*out, group*full) height weight, device-resident."""
    wh = _padded_aa_matrix(full, start, crop, out)
    return jnp.asarray(np.kron(np.eye(group), wh).astype(np.float32))


@functools.lru_cache(maxsize=1024)
def _width_weight(full, start, crop, out):
    """(full, out) pre-transposed width weight, device-resident."""
    ww = _padded_aa_matrix(full, start, crop, out)
    return jnp.asarray(np.ascontiguousarray(ww.T).astype(np.float32))


# ------------------------------ tiling selection ------------------------------

def _round_up(x, m):
    return ((x + m - 1) // m) * m


@functools.lru_cache(maxsize=1)
def _vmem_capacity_bytes():
    try:
        return int(pltpu.get_tpu_info().vmem_capacity_bytes)
    except Exception:
        return 64 << 20        # conservative fallback (v7x per-TensorCore)


def _tb_vmem_budget():
    # Per-step buffer budget with headroom under physical VMEM:
    # ~20 MiB on v7x (64 MiB VMEM), ~56 MiB on v5e/v6e (128 MiB VMEM).
    cap = _vmem_capacity_bytes()
    return (20 << 20) if cap <= (96 << 20) else (56 << 20)


def _pick_tb(B, H, W, Ho, Wo, itemsize):
    """Planes per grid step.  Budget counts double-buffered in/out blocks, the
    f32 height-pass scratch and the width-pass result temporary."""
    per_plane = (2 * H * W + 2 * Ho * Wo) * itemsize + (Ho * W + Ho * Wo) * 4
    tb = _tb_vmem_budget() // max(per_plane, 1)
    tb = max(8, min(1024, (tb // 8) * 8))
    if B >= 16:
        # >= 2 grid steps: feeds both v7x TensorCores under ("parallel",) and
        # lets the Pallas pipeline overlap DMA with compute on 1-TC chips too.
        tb = min(tb, _round_up(pl.cdiv(B, 2), 8))
    if tb >= B:
        tb = B
    return tb


def _pick_group(H, tb):
    """Planes folded into one block-diagonal height matmul: a power of two that
    divides tb, keeps K = G*H <= 256 (one MXU pass) and G <= 8."""
    g = 1
    while g < 8 and (2 * g) * H <= 256 and tb % (2 * g) == 0:
        g *= 2
    return g


# ------------------------------- Pallas kernel --------------------------------

def _make_sep_kernel(TB, H, W, Ho, Wo, G, B_total):
    n_groups = TB // G
    ragged = (B_total % TB) != 0
    unroll = n_groups <= 32   # fully unroll short loops (static offsets for LLO)

    def kernel(x_ref, whg_ref, wwt_ref, o_ref, t_ref):
        # x_ref : (TB, H, W)     whg_ref: (G*Ho, G*H)    wwt_ref: (W, Wo)
        # o_ref : (TB, Ho, Wo)   t_ref  : (TB*Ho, W) f32 scratch
        whg = whg_ref[...]
        if ragged:
            # Padding planes of the last (partial) block hold stale VMEM; zero
            # them so the block-diagonal height matmul cannot leak NaN/garbage
            # into valid planes of the same group.  OOB output rows are dropped
            # by Pallas on store.
            valid_planes = B_total - pl.program_id(0) * TB
            row = lax.broadcasted_iota(jnp.int32, (G * H, 1), 0)

        def height_pass(g, carry):
            xg = x_ref[pl.ds(pl.multiple_of(g * G, G), G)]           # (G, H, W)
            xg2 = xg.reshape(G * H, W).astype(jnp.float32)           # free when H % 8 == 0
            if ragged:
                valid_rows = jnp.clip(valid_planes - g * G, 0, G) * H
                xg2 = jnp.where(row < valid_rows, xg2, 0.0)
            t_ref[pl.ds(pl.multiple_of(g * (G * Ho), G * Ho), G * Ho), :] = jnp.dot(
                whg, xg2, preferred_element_type=jnp.float32)
            return carry

        lax.fori_loop(0, n_groups, height_pass, 0, unroll=unroll)

        # Single flat width matmul; its (TB*Ho, Wo) result reshapes into the
        # (TB, Ho, Wo) output block with no transpose (Ho % 8 == 0 in the cases
        # that matter), so the store needs no relayout.
        out = jnp.dot(t_ref[...], wwt_ref[...], preferred_element_type=jnp.float32)
        o_ref[...] = out.reshape(TB, Ho, Wo).astype(o_ref.dtype)

    return kernel


@functools.lru_cache(maxsize=None)   # keyed on static shapes only, not crop draw
def _build_resize(B, H, W, Ho, Wo, G, TB, dtype):
    itemsize = np.dtype(dtype).itemsize
    footprint = ((2 * TB * H * W + 2 * TB * Ho * Wo) * itemsize   # dbl-buffered blocks
                 + (TB * Ho * W + TB * Ho * Wo) * 4               # scratch + result temp
                 + 2 * ((G * Ho) * (G * H) + W * Wo) * 4)         # resident weights
    cap = _vmem_capacity_bytes()
    vmem_limit = int(min(cap - (4 << 20),
                         max(32 << 20, int(footprint * 1.5) + (8 << 20))))

    call = pl.pallas_call(
        _make_sep_kernel(TB, H, W, Ho, Wo, G, B),
        out_shape=jax.ShapeDtypeStruct((B, Ho, Wo), dtype),
        grid=(pl.cdiv(B, TB),),
        in_specs=[
            pl.BlockSpec((TB, H, W), lambda b: (b, 0, 0)),
            pl.BlockSpec((G * Ho, G * H), lambda b: (0, 0)),   # resident weight
            pl.BlockSpec((W, Wo), lambda b: (0, 0)),           # resident weight
        ],
        out_specs=pl.BlockSpec((TB, Ho, Wo), lambda b: (b, 0, 0)),
        scratch_shapes=[pltpu.VMEM((TB * Ho, W), jnp.float32)],
        compiler_params=pltpu.CompilerParams(
            dimension_semantics=("parallel",),
            vmem_limit_bytes=vmem_limit),
        cost_estimate=pl.CostEstimate(
            flops=2 * B * Ho * W * (H + Wo),
            transcendentals=0,
            bytes_accessed=B * (H * W + Ho * Wo) * itemsize
                           + ((G * Ho) * (G * H) + W * Wo) * 4),
    )
    return jax.jit(call)


# --------------------------------- wrapper ------------------------------------

def pallas_resize_crop(x_planes, out_hw, crop_hw, start_hw, *, tb_override=None):
    """Fused crop + antialiased-bilinear resize of a stack of planes.
    x_planes: (B, H, W); crops [s0:s0+ch, s1:s1+cw] and resizes to out_hw."""
    B, H, W = x_planes.shape
    Ho, Wo = out_hw
    ch, cw = crop_hw
    s0, s1 = start_hw
    if not (0 <= s0 and s0 + ch <= H and 0 <= s1 and s1 + cw <= W):
        raise ValueError("crop window out of bounds")
    dtype = x_planes.dtype
    tb = tb_override if tb_override is not None else _pick_tb(
        B, H, W, Ho, Wo, dtype.itemsize)
    g = _pick_group(H, tb)
    whg = _height_weight(H, s0, ch, Ho, g)   # (g*Ho, g*H), crop baked in
    wwt = _width_weight(W, s1, cw, Wo)       # (W, Wo),     crop baked in
    run = _build_resize(B, H, W, Ho, Wo, g, tb, dtype)
    return run(x_planes, whg, wwt)


# --------------------------------- module -------------------------------------

class FitVidResizedCropPallas:
    """FitVid random resized crop (square crop, ratio=(1,1)) with antialiased
    bilinear resize.  The crop is folded into the resize weights, so the whole
    augmentation is one Pallas TPU kernel over the uncropped planes."""

    def __init__(self, output_size=(64, 64), height_minimum_ratio=0.8):
        self.output_size = tuple(output_size)
        self.height_minimum_ratio = height_minimum_ratio
        self.max_wiggle = self.output_size[0] - math.ceil(
            self.height_minimum_ratio * self.output_size[0])

    def sample_crop(self, rng):
        # Host-side numpy RNG: no device<->host sync; crop params only change
        # the (tiny, cached) weight tables, never the compiled kernel.
        wiggle = int(rng.integers(0, self.max_wiggle + 1))
        s0 = int(rng.integers(0, wiggle + 1))
        s1 = int(rng.integers(0, wiggle + 1))
        return self.output_size[0] - wiggle, s0, s1

    def __call__(self, x, rng):
        lead = x.shape[:-3]
        C, H, W = x.shape[-3:]
        crop, s0, s1 = self.sample_crop(rng)
        assert s0 + crop <= H and s1 + crop <= W
        planes = x.reshape((-1, H, W))                    # leading-dim merge: free
        out = pallas_resize_crop(planes, self.output_size, (crop, crop), (s0, s1))
        return out.reshape(*lead, C, *self.output_size)   # leading-dim split: free


if __name__ == "__main__":
    key = jax.random.PRNGKey(0)
    # Small NCHW input (3 channels as in FitVid); output (8, 8) => max_wiggle=1.
    x = jax.random.normal(key, (2, 3, 16, 16), dtype=jnp.float32)
    module = FitVidResizedCropPallas(output_size=(8, 8), height_minimum_ratio=0.8)

    rng = np.random.default_rng(0)
    out = jax.block_until_ready(module(x, rng))
    assert out.shape == (2, 3, 8, 8) and out.dtype == jnp.float32

    # Pure-JAX reference with the same crop draw: padded weights applied to the
    # uncropped input == crop-then-resize.
    rng_ref = np.random.default_rng(0)
    crop, s0, s1 = module.sample_crop(rng_ref)
    wh = jnp.asarray(_padded_aa_matrix(16, s0, crop, 8).astype(np.float32))
    ww = jnp.asarray(_padded_aa_matrix(16, s1, crop, 8).astype(np.float32))
    ref = jnp.einsum("oh,nchw,pw->ncop", wh, x, ww)
    np.testing.assert_allclose(np.asarray(out), np.asarray(ref),
                               rtol=2e-5, atol=2e-5)

    # Ragged multi-step grid (B not a multiple of TB): force TB=8 on 20 planes
    # so the padding-plane masking and dropped OOB writes are exercised.
    x2 = jax.random.normal(jax.random.PRNGKey(1), (20, 16, 16), dtype=jnp.float32)
    out2 = jax.block_until_ready(
        pallas_resize_crop(x2, (8, 8), (14, 14), (1, 2), tb_override=8))
    wh2 = jnp.asarray(_padded_aa_matrix(16, 1, 14, 8).astype(np.float32))
    ww2 = jnp.asarray(_padded_aa_matrix(16, 2, 14, 8).astype(np.float32))
    ref2 = jnp.einsum("oh,bhw,pw->bop", wh2, x2, ww2)
    np.testing.assert_allclose(np.asarray(out2), np.asarray(ref2),
                               rtol=2e-5, atol=2e-5)

    print("KERNEL_OK")
</pallas_src>

<mosaic_0001>
module attributes {stable_mosaic.version = 11 : i64} {
  func.func @kernel(%arg0: i32, %arg1: memref<6x16x16xf32, #tpu.memory_space<vmem>>, %arg2: memref<16x32xf32, #tpu.memory_space<vmem>>, %arg3: memref<16x8xf32, #tpu.memory_space<vmem>>, %arg4: memref<6x8x8xf32, #tpu.memory_space<vmem>>, %arg5: memref<48x16xf32, #tpu.memory_space<vmem>>) attributes {dimension_semantics = [#tpu.dimension_semantics<parallel>], iteration_bounds = array<i64: 1>, scalar_prefetch = 0 : i64, scratch_operands = 1 : i64, tpu.core_type = #tpu.core_type<tc>, window_params = [{transform_indices = @transform_0, window_bounds = array<i64: 6, 16, 16>}, {pipeline_mode = #tpu.pipeline_mode<synchronous>, transform_indices = @transform_1, window_bounds = array<i64: 16, 32>}, {pipeline_mode = #tpu.pipeline_mode<synchronous>, transform_indices = @transform_2, window_bounds = array<i64: 16, 8>}, {transform_indices = @transform_3, window_bounds = array<i64: 6, 8, 8>}]} {
    %c0 = arith.constant 0 : index
    %c0_0 = arith.constant 0 : index
    %0 = vector.load %arg2[%c0, %c0_0] : memref<16x32xf32, #tpu.memory_space<vmem>>, vector<16x32xf32>
    %c0_i32 = arith.constant 0 : i32
    %c2_i32 = arith.constant 2 : i32
    %1 = arith.muli %c0_i32, %c2_i32 : i32
    %2 = tpu.assume_multiple %1, 2 : i32
    %3 = arith.index_cast %2 : i32 to index
    %c0_1 = arith.constant 0 : index
    %c0_2 = arith.constant 0 : index
    %4 = vector.load %arg1[%3, %c0_1, %c0_2] : memref<6x16x16xf32, #tpu.memory_space<vmem>>, vector<2x16x16xf32>
    %5 = vector.shape_cast %4 : vector<2x16x16xf32> to vector<32x16xf32>
    %cst = arith.constant dense<0.000000e+00> : vector<16x16xf32>
    %6 = tpu.matmul %0, %5, %cst {dimension_numbers = #tpu.dot_dimension_numbers<[1], [0], [0], [1], [0, 0, 1, 1], [], []>} : vector<16x32xf32>, vector<32x16xf32>, vector<16x16xf32> -> vector<16x16xf32>
    %c16_i32 = arith.constant 16 : i32
    %7 = arith.muli %c0_i32, %c16_i32 : i32
    %8 = tpu.assume_multiple %7, 16 : i32
    %9 = arith.index_cast %8 : i32 to index
    %c0_3 = arith.constant 0 : index
    %10 = vector.load %arg5[%9, %c0_3] : memref<48x16xf32, #tpu.memory_space<vmem>>, vector<16x16xf32>
    tpu.vector_store %arg5[%9, %c0_3], %6 {strides = array<i32>} : memref<48x16xf32, #tpu.memory_space<vmem>>, vector<16x16xf32>,
    %c1_i32 = arith.constant 1 : i32
    %c2_i32_4 = arith.constant 2 : i32
    %11 = arith.muli %c1_i32, %c2_i32_4 : i32
    %12 = tpu.assume_multiple %11, 2 : i32
    %13 = arith.index_cast %12 : i32 to index
    %c0_5 = arith.constant 0 : index
    %c0_6 = arith.constant 0 : index
    %14 = vector.load %arg1[%13, %c0_5, %c0_6] : memref<6x16x16xf32, #tpu.memory_space<vmem>>, vector<2x16x16xf32>
    %15 = vector.shape_cast %14 : vector<2x16x16xf32> to vector<32x16xf32>
    %cst_7 = arith.constant dense<0.000000e+00> : vector<16x16xf32>
    %16 = tpu.matmul %0, %15, %cst_7 {dimension_numbers = #tpu.dot_dimension_numbers<[1], [0], [0], [1], [0, 0, 1, 1], [], []>} : vector<16x32xf32>, vector<32x16xf32>, vector<16x16xf32> -> vector<16x16xf32>
    %c16_i32_8 = arith.constant 16 : i32
    %17 = arith.muli %c1_i32, %c16_i32_8 : i32
    %18 = tpu.assume_multiple %17, 16 : i32
    %19 = arith.index_cast %18 : i32 to index
    %c0_9 = arith.constant 0 : index
    %20 = vector.load %arg5[%19, %c0_9] : memref<48x16xf32, #tpu.memory_space<vmem>>, vector<16x16xf32>
    tpu.vector_store %arg5[%19, %c0_9], %16 {strides = array<i32>} : memref<48x16xf32, #tpu.memory_space<vmem>>, vector<16x16xf32>,
    %c2_i32_10 = arith.constant 2 : i32
    %c2_i32_11 = arith.constant 2 : i32
    %21 = arith.muli %c2_i32_10, %c2_i32_11 : i32
    %22 = tpu.assume_multiple %21, 2 : i32
    %23 = arith.index_cast %22 : i32 to index
    %c0_12 = arith.constant 0 : index
    %c0_13 = arith.constant 0 : index
    %24 = vector.load %arg1[%23, %c0_12, %c0_13] : memref<6x16x16xf32, #tpu.memory_space<vmem>>, vector<2x16x16xf32>
    %25 = vector.shape_cast %24 : vector<2x16x16xf32> to vector<32x16xf32>
    %cst_14 = arith.constant dense<0.000000e+00> : vector<16x16xf32>
    %26 = tpu.matmul %0, %25, %cst_14 {dimension_numbers = #tpu.dot_dimension_numbers<[1], [0], [0], [1], [0, 0, 1, 1], [], []>} : vector<16x32xf32>, vector<32x16xf32>, vector<16x16xf32> -> vector<16x16xf32>
    %c16_i32_15 = arith.constant 16 : i32
    %27 = arith.muli %c2_i32_10, %c16_i32_15 : i32
    %28 = tpu.assume_multiple %27, 16 : i32
    %29 = arith.index_cast %28 : i32 to index
    %c0_16 = arith.constant 0 : index
    %30 = vector.load %arg5[%29, %c0_16] : memref<48x16xf32, #tpu.memory_space<vmem>>, vector<16x16xf32>
    tpu.vector_store %arg5[%29, %c0_16], %26 {strides = array<i32>} : memref<48x16xf32, #tpu.memory_space<vmem>>, vector<16x16xf32>,
    %c3_i32 = arith.constant 3 : i32
    %c0_17 = arith.constant 0 : index
    %c0_18 = arith.constant 0 : index
    %31 = vector.load %arg5[%c0_17, %c0_18] : memref<48x16xf32, #tpu.memory_space<vmem>>, vector<48x16xf32>
    %c0_19 = arith.constant 0 : index
    %c0_20 = arith.constant 0 : index
    %32 = vector.load %arg3[%c0_19, %c0_20] : memref<16x8xf32, #tpu.memory_space<vmem>>, vector<16x8xf32>
    %cst_21 = arith.constant dense<0.000000e+00> : vector<48x8xf32>
    %33 = tpu.matmul %31, %32, %cst_21 {dimension_numbers = #tpu.dot_dimension_numbers<[1], [0], [0], [1], [0, 0, 1, 1], [], []>} : vector<48x16xf32>, vector<16x8xf32>, vector<48x8xf32> -> vector<48x8xf32>
    %34 = vector.shape_cast %33 : vector<48x8xf32> to vector<6x8x8xf32>
    %c0_22 = arith.constant 0 : index
    %c0_23 = arith.constant 0 : index
    %c0_24 = arith.constant 0 : index
    %35 = vector.load %arg4[%c0_22, %c0_23, %c0_24] : memref<6x8x8xf32, #tpu.memory_space<vmem>>, vector<6x8x8xf32>
    tpu.vector_store %arg4[%c0_22, %c0_23, %c0_24], %34 {strides = array<i32>} : memref<6x8x8xf32, #tpu.memory_space<vmem>>, vector<6x8x8xf32>,
    return
  }
  func.func @transform_0(%arg0: i32) -> (i32, i32, i32) {
    %c0_i32 = arith.constant 0 : i32
    %c0_i32_0 = arith.constant 0 : i32
    %c0_i32_1 = arith.constant 0 : i32
    return %arg0, %c0_i32, %c0_i32_0 : i32, i32, i32
  }
  func.func @transform_1(%arg0: i32) -> (i32, i32) {
    %c0_i32 = arith.constant 0 : i32
    %c0_i32_0 = arith.constant 0 : i32
    %c0_i32_1 = arith.constant 0 : i32
    return %c0_i32, %c0_i32_0 : i32, i32
  }
  func.func @transform_2(%arg0: i32) -> (i32, i32) {
    %c0_i32 = arith.constant 0 : i32
    %c0_i32_0 = arith.constant 0 : i32
    %c0_i32_1 = arith.constant 0 : i32
    return %c0_i32, %c0_i32_0 : i32, i32
  }
  func.func @transform_3(%arg0: i32) -> (i32, i32, i32) {
    %c0_i32 = arith.constant 0 : i32
    %c0_i32_0 = arith.constant 0 : i32
    %c0_i32_1 = arith.constant 0 : i32
    return %arg0, %c0_i32, %c0_i32_0 : i32, i32, i32
  }
}

</mosaic_0001>

<bundles_post_ra>
// kernel: tpu_custom_call.1
= control target key start
LH: loop header
LB: loop body
LE: loop exit
PB: predicated region body
PF: predicated region fallthrough
CT: control target
= control target key end

     0   :  { %8 = vsyncpa [#allocation4], 0  ;;  %s685_s0 = inlined_call_operand.hbm [shape: f32[6,16,16], index: 0, kind: input, shape index: {}]   ;;  %s686_s1 = inlined_call_operand.vmem [shape: f32[16,32], index: 1, kind: input, shape index: {}]   ;;  %s687_s2 = inlined_call_operand.vmem [shape: f32[16,8], index: 2, kind: input, shape index: {}]   ;;  %s688_s3 = inlined_call_operand.hbm [shape: f32[6,8,8], index: 3, kind: output, shape index: {}]  }
   0x1   :  { %9 = vsyncpa [#allocation5], 0  ;;  %s601_s12 = smov [#allocation3]   ;;  %s553_s16 = scalar_lea.hbm %s685_s0, 1536 }
   0x2   :  { %s15_s13 = sshll.u32 %s601_s12, 4  ;;  %p554_p0 = scmp.ne.s32.totalorder %s685_s0, %s553_s16  ;;  %s16_s13 = int_to_ptr.vmem [resolvable:$true] %s15_s13 }
   0x3   :  { %p557_p1 = scmp.lt.u32.totalorder %s553_s16, %s685_s0 }
   0x5   :  { %p559_p2 = pnand %p557_p1, %p554_p0 }
   0x7   :  { %562 = shalt.err (!%p559_p2)
}
   0x8   :  { %s563_s21 = scalar_lea.vmem %s16_s13, 1536  ;;  %p568_p4 = scmp.lt.s32.totalorder %s16_s13, %s16_s13 }
   0x9   :  { %p564_p3 = scmp.ne.s32.totalorder %s16_s13, %s563_s21  ;;  %p569_p5 = scmp.lt.s32.totalorder %s563_s21, %s563_s21 }
   0xb   :  { %p570_p6 = por %p569_p5, %p568_p4 }
   0xd   :  { %p571_p7 = pnand %p570_p6, %p564_p3 }
   0xf   :  { %574 = shalt.err (!%p571_p7)
}
  0x10   :  { %s602_s22 = smov 128   ;;  %s603_s23 = smov 8  }
  0x11   :  { %21 = dma.hbm_to_vmem [thread:$0]  %s685_s0, 1536, %s16_s13, [#allocation4], %s602_s22, %s602_s22, %s603_s23  }
  0x12   :  { %597 = dma.done.wait [#allocation4], 1536  }
  0x13   :  { %598 = vsyncadd [#allocation4], 4294965760  ;;  %v33_v0 = vld [vmem:[#allocation3] sm:$0xff]  ;;  %v34_v1 = vld [vmem:[#allocation3 + $0x8] sm:$0xff]  ;;  %vm37_vm0 = vcmask 261120   ;;  %vm119_vm1 = vcmask 130048  }
  0x14   :  { %v124_v2 = vld [vmem:[#allocation3 + $0x20] sm:$0xff]  ;;  %v521_v3 = vpack.c.bf16 %v34_v1, %v33_v0  ;;  %v125_v4 = vld [vmem:[#allocation3 + $0x28] sm:$0xff]  ;;  %v35_v5 = vld [vmem:[#allocation3 + $0x10] sm:$0xff]  ;;  %vm411_vm2 = vcmask 64512  }
  0x15   :  { %v36_v6 = vld [vmem:[#allocation3 + $0x18] sm:$0xff]  ;;  %v529_v7 = vpack.c.bf16 %v125_v4, %v124_v2  ;;  %v29_v9 = vld [vmem:[%s686_s1] sm:$0xff]  ;;  %v208_v13 = vld [vmem:[#allocation3 + $0x40] sm:$0xff] }
  0x16   :  { %v525_v8 = vpack.c.bf16 %v36_v6, %v35_v5  ;;  %v126_v10 = vld [vmem:[#allocation3 + $0x30] sm:$0xff]  ;;  %v127_v11 = vld [vmem:[#allocation3 + $0x38] sm:$0xff]  ;;  %522 = vmatprep.subr.bf16.mxu0 %v521_v3  ;;  %483 = vmatprep.mubr.msk.f32.mxu0 %vm37_vm0, %v29_v9  ;;  %v209_v14 = vld [vmem:[#allocation3 + $0x48] sm:$0xff] }
  0x17   :  { %v533_v12 = vpack.c.bf16 %v127_v11, %v126_v10  ;;  %524 = vmatpush3.bf16.msra.mxu0 %v521_v3  ;;  %530 = vmatprep.subr.bf16.mxu1 %v529_v7  ;;  %v537_v15 = vpack.c.bf16 %v209_v14, %v208_v13  ;;  %v210_v16 = vld [vmem:[#allocation3 + $0x50] sm:$0xff]  ;;  %v211_v17 = vld [vmem:[#allocation3 + $0x58] sm:$0xff] }
  0x18   :  { %526 = vmatprep.subr.bf16.mxu0 %v525_v8  ;;  %532 = vmatpush3.bf16.msra.mxu1 %v529_v7  ;;  %v30_v18 = vld [vmem:[%s686_s1 + $0x8] sm:$0xff]  ;;  %v541_v19 = vpack.c.bf16 %v211_v17, %v210_v16  ;;  %v296_v20 = vld [vmem:[%s687_s2] sm:$0xff] }
  0x19   :  { %534 = vmatprep.subr.bf16.mxu1 %v533_v12  ;;  %494 = vmatprep.mubr.msk.f32.mxu1 %vm37_vm0, %v29_v9  ;;  %v297_v21 = vld [vmem:[%s687_s2 + $0x8] sm:$0xff]  ;;  %s604_s2 = smov [#allocation6]  }
  0x1a   :  { %v545_v22 = vpack.c.bf16 %v297_v21, %v296_v20  ;;  %s423_s5 = sshll.u32 %s604_s2, 4  ;;  %s424_s5 = int_to_ptr.vmem [resolvable:$true] %s423_s5 }
  0x1b   :  { %528 = vmatpush3.bf16.msra.mxu0 %v525_v8  ;;  %s575_s6 = scalar_lea.vmem %s424_s5, 768  ;;  %p580_p9 = scmp.lt.s32.totalorder %s424_s5, %s424_s5 }
  0x1c   :  { %536 = vmatpush3.bf16.msra.mxu1 %v533_v12  ;;  %538 = vmatprep.subr.bf16.mxu0 %v537_v15  ;;  %p576_p8 = scmp.ne.s32.totalorder %s424_s5, %s575_s6  ;;  %p581_p10 = scmp.lt.s32.totalorder %s575_s6, %s575_s6 }
  0x1d   :  { %546 = vmatprep.subr.bf16.mxu1 %v545_v22 }
  0x1e   :  { %484 = vmatmul.mubr.msk.f32.vlgmr.msra.gmra.mrb[0].mxu0 %vm37_vm0, %v30_v18  ;;  %p582_p11 = por %p581_p10, %p580_p9 }
  0x1f   :  { %540 = vmatpush3.bf16.msra.mxu0 %v537_v15  ;;  %495 = vmatmul.mubr.msk.f32.vlgmr.msra.gmra.mrb[0].mxu1 %vm37_vm0, %v30_v18 }
  0x20   :  { %542 = vmatprep.subr.bf16.mxu0 %v541_v19  ;;  %505 = vmatprep.mubr.msk.f32.mxu0 %vm37_vm0, %v29_v9  ;;  %p583_p12 = pnand %p582_p11, %p576_p8 }
  0x21   :  { %548 = vmatpush3.bf16.msra.mxu1 %v545_v22 }
  0x23   :  { %544 = vmatpush3.bf16.msra.mxu0 %v541_v19 }
  0x26   :  { %506 = vmatmul.mubr.msk.f32.vlgmr.msra.gmra.mrb[2].mxu0 %vm37_vm0, %v30_v18 }
  0xf1   :  { %v485_v23 = vpop.f32.mrb[0].mxu0 }
  0xf2   :  { %121 = vst.msk [vmem:[#allocation2 + $0x8] sm:$0xff] %vm119_vm1, %v485_v23  ;;  %v110_v24 = vpop.f32.mrb[1].mxu0  ;;  %v496_v25 = vpop.f32.mrb[0].mxu1 }
  0xf3   :  { %120 = vst.msk [vmem:[#allocation2] sm:$0xff] %vm119_vm1, %v110_v24  ;;  %205 = vst.msk [vmem:[#allocation2 + $0x18] sm:$0xff] %vm119_vm1, %v496_v25  ;;  %v194_v26 = vpop.f32.mrb[1].mxu1 }
  0xf4   :  { %204 = vst.msk [vmem:[#allocation2 + $0x10] sm:$0xff] %vm119_vm1, %v194_v26 }
  0xf9   :  { %v507_v27 = vpop.f32.mrb[2].mxu0  ;;  %v291_v30 = vld [vmem:[#allocation2 + $0x8] sm:$0xff] }
  0xfa   :  { %289 = vst.msk [vmem:[#allocation2 + $0x28] sm:$0xff] %vm119_vm1, %v507_v27  ;;  %v278_v28 = vpop.f32.mrb[3].mxu0  ;;  %v290_v29 = vld [vmem:[#allocation2] sm:$0xff]  ;;  %v293_v32 = vld [vmem:[#allocation2 + $0x18] sm:$0xff] }
  0xfb   :  { %288 = vst.msk [vmem:[#allocation2 + $0x20] sm:$0xff] %vm119_vm1, %v278_v28  ;;  %512 = vmatprep.mubr.msk.f32.mxu1 %vm119_vm1, %v290_v29  ;;  %v292_v31 = vld [vmem:[#allocation2 + $0x10] sm:$0xff] }
  0xfc   :  { %513 = vmatmul.mubr.msk.f32.vlgmr.msra.gmra.mrb[2].mxu1 %vm119_vm1, %v291_v30 }
  0xfd   :  { %515 = vmatprep.mubr.msk.f32.mxu1 %vm119_vm1, %v292_v31 }
 0x100   :  { %516 = vmatmul.mubr.msk.f32.gmra.mrb[4].mxu1 %vm119_vm1, %v293_v32 }
 0x101   :  { %v295_v34 = vld [vmem:[#allocation2 + $0x28] sm:$0xff] }
 0x102   :  { %v294_v33 = vld [vmem:[#allocation2 + $0x20] sm:$0xff] }
 0x103   :  { %518 = vmatprep.mubr.msk.f32.mxu1 %vm119_vm1, %v294_v33 }
 0x104   :  { %519 = vmatmul.mubr.msk.f32.gmra.mrb[6].mxu1 %vm119_vm1, %v295_v34 }
 0x1cf   :  { %v514_v35 = vpop.f32.mrb[2].mxu1 }
 0x1d0   :  { %413 = vst.msk [vmem:[#allocation6 + $0x8] sm:$0xff] %vm411_vm2, %v514_v35  ;;  %v382_v36 = vpop.f32.mrb[3].mxu1 }
 0x1d1   :  { %412 = vst.msk [vmem:[#allocation6] sm:$0xff] %vm411_vm2, %v382_v36 }
 0x1d3   :  { %v517_v37 = vpop.f32.mrb[4].mxu1 }
 0x1d4   :  { %415 = vst.msk [vmem:[#allocation6 + $0x18] sm:$0xff] %vm411_vm2, %v517_v37  ;;  %v392_v38 = vpop.f32.mrb[5].mxu1 }
 0x1d5   :  { %414 = vst.msk [vmem:[#allocation6 + $0x10] sm:$0xff] %vm411_vm2, %v392_v38 }
 0x1d7   :  { %v520_v39 = vpop.f32.mrb[6].mxu1 }
 0x1d8   :  { %417 = vst.msk [vmem:[#allocation6 + $0x28] sm:$0xff] %vm411_vm2, %v520_v39  ;;  %v402_v40 = vpop.f32.mrb[7].mxu1 }
 0x1d9   :  { %416 = vst.msk [vmem:[#allocation6 + $0x20] sm:$0xff] %vm411_vm2, %v402_v40 }
 0x1da   :  { %586 = shalt.err (!%p583_p12)
}
 0x1db   :  { %s587_s9 = scalar_lea.hbm %s688_s3, 768 }
 0x1dc   :  { %p588_p13 = scmp.ne.s32.totalorder %s688_s3, %s587_s9  ;;  %p591_p0 = scmp.lt.u32.totalorder %s587_s9, %s688_s3 }
 0x1de   :  { %p593_p1 = pnand %p591_p0, %p588_p13 }
 0x1e0   :  { %596 = shalt.err (!%p593_p1)
}
 0x1e1   :  { %429 = dma.vmem_to_hbm [thread:$0]  %s424_s5, 768, %s688_s3, [#allocation5], %s602_s22, %s602_s22, %s603_s23  }
 0x1e2   :  { %599 = dma.done.wait [#allocation5], 768  }
 0x1e3   :  { %600 = vsyncadd [#allocation5], 4294966528 }
 0x1e4   :  { %433 = vsyncpa [#allocation4], 1 }
 0x1e5   :  { %434 = vsyncpa [#allocation5], 1 }

</bundles_post_ra>
